<compile_context>
chip_gen: v7x
topology: tpu7x:2x2x1
jax: 0.10.0
libtpu: 0.0.40
codegen_flags: <defaults>
</compile_context>

<pallas_src>
import functools

import jax
import jax.numpy as jnp
from jax.experimental import pallas as pl
from jax.experimental.pallas import tpu as pltpu


def _attention_fusion_kernel(x_ref, wf_ref, bf_ref, o_ref, *, scale, inv_m):
    tb, m_dim, e_dim = x_ref.shape            # (TB, M, E) block
    ep = wf_ref.shape[1] // 3                 # padded per-projection lane stride (>= E)

    # Flatten the batch tile to (TB*M, E) and run ONE fused QKV projection on the MXU,
    # accumulating in f32.
    x2 = x_ref[...].reshape(tb * m_dim, e_dim)
    qkv = (jnp.dot(x2, wf_ref[...], preferred_element_type=jnp.float32)
           + bf_ref[...].astype(jnp.float32))                      # (TB*M, 3*Ep)

    # Slice q/k/v at 128-lane-aligned offsets and restore the (TB, M, E) view.
    q = qkv[:, 0:e_dim].reshape(tb, m_dim, e_dim)
    k = qkv[:, ep:ep + e_dim].reshape(tb, m_dim, e_dim)
    v = qkv[:, 2 * ep:2 * ep + e_dim].reshape(tb, m_dim, e_dim)

    # attn_scores = Q @ K^T * scale  -> (TB, M, M); batched einsum (jnp.dot is not batched).
    scores = jnp.einsum("bme,bne->bmn", q, k,
                        preferred_element_type=jnp.float32) * scale

    # torch.nn.Softmax(dim=1): normalize over the query axis (axis 1 of (B, M, M)).
    col_max = jnp.max(scores, axis=1, keepdims=True)
    exps = jnp.exp(scores - col_max)
    denom = jnp.sum(exps, axis=1, keepdims=True)
    weights = exps * pl.reciprocal(denom, approx=True)             # EUP reciprocal

    # fused = attn_weights @ V -> (TB, M, E); then mean over dim=1 -> (TB, E).
    fused = jnp.einsum("bmn,bne->bme", weights, v,
                       preferred_element_type=jnp.float32)
    o_ref[...] = (jnp.sum(fused, axis=1) * inv_m).astype(o_ref.dtype)


def _pick_tb(B, M):
    """Batch-tile size: ~256 projection rows per step, multiple of 8 unless it covers B."""
    tb = max(1, 256 // max(M, 1))
    tb = ((tb + 7) // 8) * 8
    if tb >= B:
        return B
    return tb


def attention_fusion(x, wq, bq, wk, bk, wv, bv):
    """Pallas TPU forward of AttentionFusion.

    Args:
      x: (B, M, E) activations (B=batch, M=num_modalities, E=embed_dim), f32 or bf16.
      wq/wk/wv: (E, E) nn.Linear weights in PyTorch layout (out_features, in_features).
      bq/bk/bv: (E,) biases.
    Returns:
      (B, E) fused features (same dtype as x), matching the PyTorch module's forward.
    """
    B, M, E = x.shape
    dtype = x.dtype
    scale = float(E) ** -0.5
    ep = ((E + 127) // 128) * 128             # lane-tile-aligned per-projection stride

    # Fused, pre-transposed QKV weight (in, 3*Ep) with each projection starting on a
    # 128-lane boundary; matching fused bias (1, 3*Ep).  Built once outside the kernel.
    wf = jnp.zeros((E, 3 * ep), dtype)
    wf = wf.at[:, 0:E].set(wq.T.astype(dtype))
    wf = wf.at[:, ep:ep + E].set(wk.T.astype(dtype))
    wf = wf.at[:, 2 * ep:2 * ep + E].set(wv.T.astype(dtype))
    bf = jnp.zeros((1, 3 * ep), dtype)
    bf = bf.at[0, 0:E].set(bq.astype(dtype))
    bf = bf.at[0, ep:ep + E].set(bk.astype(dtype))
    bf = bf.at[0, 2 * ep:2 * ep + E].set(bv.astype(dtype))

    tb = _pick_tb(B, M)
    b_pad = pl.cdiv(B, tb) * tb
    if b_pad != B:
        x = jnp.pad(x, ((0, b_pad - B), (0, 0), (0, 0)))

    kernel = functools.partial(_attention_fusion_kernel, scale=scale, inv_m=1.0 / M)

    out = pl.pallas_call(
        kernel,
        out_shape=jax.ShapeDtypeStruct((b_pad, E), dtype),
        grid_spec=pltpu.PrefetchScalarGridSpec(
            num_scalar_prefetch=0,
            grid=(b_pad // tb,),
            in_specs=[
                pl.BlockSpec((tb, M, E), lambda b: (b, 0, 0)),     # x batch tile
                pl.BlockSpec((E, 3 * ep), lambda b: (0, 0)),       # fused W_qkv^T
                pl.BlockSpec((1, 3 * ep), lambda b: (0, 0)),       # fused bias
            ],
            out_specs=pl.BlockSpec((tb, E), lambda b: (b, 0)),     # dense (TB, E) slab
        ),
        compiler_params=pltpu.CompilerParams(
            dimension_semantics=("parallel",),
        ),
    )(x, wf, bf)

    return out[:B] if b_pad != B else out


def attention_fusion_ref(x, wq, bq, wk, bk, wv, bv):
    """Pure-JAX reference matching the PyTorch module exactly (f32 math)."""
    x = x.astype(jnp.float32)
    q = x @ wq.T.astype(jnp.float32) + bq.astype(jnp.float32)
    k = x @ wk.T.astype(jnp.float32) + bk.astype(jnp.float32)
    v = x @ wv.T.astype(jnp.float32) + bv.astype(jnp.float32)
    scale = x.shape[-1] ** -0.5
    scores = jnp.einsum("bme,bne->bmn", q, k) * scale
    weights = jax.nn.softmax(scores, axis=1)          # dim=1, as in the module
    fused = jnp.einsum("bmn,bne->bme", weights, v)
    return fused.mean(axis=1)


if __name__ == "__main__":
    key = jax.random.PRNGKey(0)

    def run_case(B, M, E, dtype, tol):
        ks = jax.random.split(jax.random.fold_in(key, B * 1000 + M * 100 + E), 7)
        lim = 1.0 / (E ** 0.5)                 # nn.Linear default init range
        x = jax.random.normal(ks[0], (B, M, E), jnp.float32)
        wq = jax.random.uniform(ks[1], (E, E), jnp.float32, -lim, lim)
        bq = jax.random.uniform(ks[2], (E,), jnp.float32, -lim, lim)
        wk = jax.random.uniform(ks[3], (E, E), jnp.float32, -lim, lim)
        bk = jax.random.uniform(ks[4], (E,), jnp.float32, -lim, lim)
        wv = jax.random.uniform(ks[5], (E, E), jnp.float32, -lim, lim)
        bv = jax.random.uniform(ks[6], (E,), jnp.float32, -lim, lim)

        args = [a.astype(dtype) for a in (x, wq, bq, wk, bk, wv, bv)]
        out = jax.block_until_ready(attention_fusion(*args))
        ref = attention_fusion_ref(*args)      # same (possibly bf16-rounded) inputs, f32 math

        assert out.shape == (B, E), (out.shape, (B, E))
        assert jnp.allclose(out.astype(jnp.float32), ref, rtol=tol, atol=tol), (
            B, M, E, str(dtype), float(jnp.max(jnp.abs(out.astype(jnp.float32) - ref))))

    # Small sanity case (single grid step, block == full batch).
    run_case(2, 4, 32, jnp.float32, 5e-3)
    # Batched path: TB=64, batch padded 80 -> 128, grid of 2 parallel steps.
    run_case(80, 4, 32, jnp.float32, 5e-3)
    # bf16 operands (half the DMA bytes), f32 accumulation inside the kernel.
    run_case(80, 4, 32, jnp.bfloat16, 3e-2)

    print("KERNEL_OK")
</pallas_src>

<mosaic_0001>
module attributes {stable_mosaic.version = 11 : i64} {
  func.func @_attention_fusion_kernel(%arg0: i32, %arg1: memref<2x4x32xf32, #tpu.memory_space<vmem>>, %arg2: memref<32x384xf32, #tpu.memory_space<vmem>>, %arg3: memref<1x384xf32, #tpu.memory_space<vmem>>, %arg4: memref<2x32xf32, #tpu.memory_space<vmem>>) attributes {dimension_semantics = [#tpu.dimension_semantics<parallel>], iteration_bounds = array<i64: 1>, scalar_prefetch = 0 : i64, scratch_operands = 0 : i64, tpu.core_type = #tpu.core_type<tc>, window_params = [{transform_indices = @transform_0, window_bounds = array<i64: 2, 4, 32>}, {pipeline_mode = #tpu.pipeline_mode<synchronous>, transform_indices = @transform_1, window_bounds = array<i64: 32, 384>}, {pipeline_mode = #tpu.pipeline_mode<synchronous>, transform_indices = @transform_2, window_bounds = array<i64: 1, 384>}, {transform_indices = @transform_3, window_bounds = array<i64: 2, 32>}]} {
    %c0 = arith.constant 0 : index
    %c0_0 = arith.constant 0 : index
    %c0_1 = arith.constant 0 : index
    %0 = vector.load %arg1[%c0, %c0_0, %c0_1] : memref<2x4x32xf32, #tpu.memory_space<vmem>>, vector<2x4x32xf32>
    %1 = vector.shape_cast %0 : vector<2x4x32xf32> to vector<8x32xf32>
    %c0_2 = arith.constant 0 : index
    %c0_3 = arith.constant 0 : index
    %2 = vector.load %arg2[%c0_2, %c0_3] : memref<32x384xf32, #tpu.memory_space<vmem>>, vector<32x384xf32>
    %cst = arith.constant dense<0.000000e+00> : vector<8x384xf32>
    %3 = tpu.matmul %1, %2, %cst {dimension_numbers = #tpu.dot_dimension_numbers<[1], [0], [0], [1], [0, 0, 1, 1], [], []>} : vector<8x32xf32>, vector<32x384xf32>, vector<8x384xf32> -> vector<8x384xf32>
    %c0_4 = arith.constant 0 : index
    %c0_5 = arith.constant 0 : index
    %4 = vector.load %arg3[%c0_4, %c0_5] : memref<1x384xf32, #tpu.memory_space<vmem>>, vector<1x384xf32>
    %5 = vector.broadcast %4 : vector<1x384xf32> to vector<8x384xf32>
    %6 = arith.addf %3, %5 : vector<8x384xf32>
    %7 = vector.extract_strided_slice %6 {offsets = [0, 0], sizes = [8, 32], strides = [1, 1]} : vector<8x384xf32> to vector<8x32xf32>
    %8 = vector.shape_cast %7 : vector<8x32xf32> to vector<2x4x32xf32>
    %9 = vector.extract_strided_slice %6 {offsets = [0, 128], sizes = [8, 32], strides = [1, 1]} : vector<8x384xf32> to vector<8x32xf32>
    %10 = vector.shape_cast %9 : vector<8x32xf32> to vector<2x4x32xf32>
    %11 = vector.extract_strided_slice %6 {offsets = [0, 256], sizes = [8, 32], strides = [1, 1]} : vector<8x384xf32> to vector<8x32xf32>
    %12 = vector.shape_cast %11 : vector<8x32xf32> to vector<2x4x32xf32>
    "tpu.trace_start"() <{level = 10 : i32, message = "bme,bne->bmn"}> : () -> ()
    %cst_6 = arith.constant dense<0.000000e+00> : vector<2x4x4xf32>
    %13 = tpu.matmul %8, %10, %cst_6 {dimension_numbers = #tpu.dot_dimension_numbers<[2], [2], [1], [1], [0, 0, 0, 1, 1, 1], [0], [0]>} : vector<2x4x32xf32>, vector<2x4x32xf32>, vector<2x4x4xf32> -> vector<2x4x4xf32>
    "tpu.trace_stop"() : () -> ()
    %cst_7 = arith.constant 0.176776692 : f32
    %14 = vector.broadcast %cst_7 : f32 to vector<2x4x4xf32>
    %15 = arith.mulf %13, %14 : vector<2x4x4xf32>
    %cst_8 = arith.constant dense<0xFF800000> : vector<2x4xf32>
    %16 = vector.multi_reduction <maximumf>, %15, %cst_8 [1] : vector<2x4x4xf32> to vector<2x4xf32>
    %17 = vector.shape_cast %16 : vector<2x4xf32> to vector<2x1x4xf32>
    %18 = vector.broadcast %17 : vector<2x1x4xf32> to vector<2x4x4xf32>
    %19 = arith.subf %15, %18 : vector<2x4x4xf32>
    %20 = math.exp %19 : vector<2x4x4xf32>
    %cst_9 = arith.constant dense<0.000000e+00> : vector<2x4xf32>
    %21 = vector.multi_reduction <add>, %20, %cst_9 [1] : vector<2x4x4xf32> to vector<2x4xf32>
    %22 = vector.shape_cast %21 : vector<2x4xf32> to vector<2x1x4xf32>
    %23 = tpu.reciprocal %22 {approx = true} : vector<2x1x4xf32> -> vector<2x1x4xf32>
    %24 = vector.broadcast %23 : vector<2x1x4xf32> to vector<2x4x4xf32>
    %25 = arith.mulf %20, %24 : vector<2x4x4xf32>
    "tpu.trace_start"() <{level = 10 : i32, message = "bmn,bne->bme"}> : () -> ()
    %cst_10 = arith.constant dense<0.000000e+00> : vector<2x4x32xf32>
    %26 = tpu.matmul %25, %12, %cst_10 {dimension_numbers = #tpu.dot_dimension_numbers<[2], [1], [1], [2], [0, 0, 0, 1, 1, 2], [0], [0]>} : vector<2x4x4xf32>, vector<2x4x32xf32>, vector<2x4x32xf32> -> vector<2x4x32xf32>
    "tpu.trace_stop"() : () -> ()
    %cst_11 = arith.constant dense<0.000000e+00> : vector<2x32xf32>
    %27 = vector.multi_reduction <add>, %26, %cst_11 [1] : vector<2x4x32xf32> to vector<2x32xf32>
    %cst_12 = arith.constant 2.500000e-01 : f32
    %28 = vector.broadcast %cst_12 : f32 to vector<2x32xf32>
    %29 = arith.mulf %27, %28 : vector<2x32xf32>
    %c0_13 = arith.constant 0 : index
    %c0_14 = arith.constant 0 : index
    %30 = vector.load %arg4[%c0_13, %c0_14] : memref<2x32xf32, #tpu.memory_space<vmem>>, vector<2x32xf32>
    tpu.vector_store %arg4[%c0_13, %c0_14], %29 {strides = array<i32>} : memref<2x32xf32, #tpu.memory_space<vmem>>, vector<2x32xf32>,
    return
  }
  func.func @transform_0(%arg0: i32) -> (i32, i32, i32) {
    %c0_i32 = arith.constant 0 : i32
    %c0_i32_0 = arith.constant 0 : i32
    %c0_i32_1 = arith.constant 0 : i32
    return %arg0, %c0_i32, %c0_i32_0 : i32, i32, i32
  }
  func.func @transform_1(%arg0: i32) -> (i32, i32) {
    %c0_i32 = arith.constant 0 : i32
    %c0_i32_0 = arith.constant 0 : i32
    %c0_i32_1 = arith.constant 0 : i32
    return %c0_i32, %c0_i32_0 : i32, i32
  }
  func.func @transform_2(%arg0: i32) -> (i32, i32) {
    %c0_i32 = arith.constant 0 : i32
    %c0_i32_0 = arith.constant 0 : i32
    %c0_i32_1 = arith.constant 0 : i32
    return %c0_i32, %c0_i32_0 : i32, i32
  }
  func.func @transform_3(%arg0: i32) -> (i32, i32) {
    %c0_i32 = arith.constant 0 : i32
    %c0_i32_0 = arith.constant 0 : i32
    return %arg0, %c0_i32 : i32, i32
  }
}

</mosaic_0001>

<bundles_post_ra>
// kernel: tpu_custom_call.1
= control target key start
LH: loop header
LB: loop body
LE: loop exit
PB: predicated region body
PF: predicated region fallthrough
CT: control target
= control target key end

     0   :  { %8 = vsyncpa [#allocation3], 0  ;;  %s851_s0 = inlined_call_operand.hbm [shape: f32[2,4,32], index: 0, kind: input, shape index: {}]   ;;  %s852_s1 = inlined_call_operand.hbm [shape: f32[32,384], index: 1, kind: input, shape index: {}]   ;;  %s853_s2 = inlined_call_operand.vmem [shape: f32[1,384], index: 2, kind: input, shape index: {}]   ;;  %s854_s3 = inlined_call_operand.hbm [shape: f32[2,32], index: 3, kind: output, shape index: {}]  }
   0x1   :  { %9 = vsyncpa [#allocation6], 0 }
   0x2   :  { %10 = vsyncpa [#allocation4], 0  ;;  %s767_s12 = smov [#allocation2]   ;;  %s695_s16 = scalar_lea.hbm %s851_s0, 128 }
   0x3   :  { %s16_s13 = sshll.u32 %s767_s12, 4  ;;  %p696_p0 = scmp.ne.s32.totalorder %s851_s0, %s695_s16  ;;  %s17_s13 = int_to_ptr.vmem [resolvable:$true] %s16_s13 }
   0x4   :  { %p699_p1 = scmp.lt.u32.totalorder %s695_s16, %s851_s0 }
   0x6   :  { %p701_p2 = pnand %p699_p1, %p696_p0 }
   0x8   :  { %704 = shalt.err (!%p701_p2)
}
   0x9   :  { %s705_s21 = scalar_lea.vmem %s17_s13, 128  ;;  %p710_p4 = scmp.lt.s32.totalorder %s17_s13, %s17_s13 }
   0xa   :  { %p706_p3 = scmp.ne.s32.totalorder %s17_s13, %s705_s21  ;;  %p711_p5 = scmp.lt.s32.totalorder %s705_s21, %s705_s21 }
   0xc   :  { %p712_p6 = por %p711_p5, %p710_p4 }
   0xe   :  { %p713_p7 = pnand %p712_p6, %p706_p3 }
  0x10   :  { %716 = shalt.err (!%p713_p7)
}
  0x11   :  { %s768_s22 = smov 64   ;;  %s769_s23 = smov 4  }
  0x12   :  { %22 = dma.hbm_to_vmem [thread:$0]  %s851_s0, 128, %s17_s13, [#allocation3], %s768_s22, %s768_s22, %s769_s23  }
  0x13   :  { %s770_s26 = smov [#allocation5]   ;;  %s717_s30 = scalar_lea.hbm %s852_s1, 1536 }
  0x14   :  { %s28_s27 = sshll.u32 %s770_s26, 4  ;;  %p718_p8 = scmp.ne.s32.totalorder %s852_s1, %s717_s30  ;;  %s29_s27 = int_to_ptr.vmem [resolvable:$true] %s28_s27 }
  0x15   :  { %p721_p9 = scmp.lt.u32.totalorder %s717_s30, %s852_s1 }
  0x17   :  { %p723_p10 = pnand %p721_p9, %p718_p8 }
  0x19   :  { %726 = shalt.err (!%p723_p10)
}
  0x1a   :  { %s727_s8 = scalar_lea.vmem %s29_s27, 1536  ;;  %p732_p12 = scmp.lt.s32.totalorder %s29_s27, %s29_s27 }
  0x1b   :  { %p728_p11 = scmp.ne.s32.totalorder %s29_s27, %s727_s8  ;;  %p733_p13 = scmp.lt.s32.totalorder %s727_s8, %s727_s8 }
  0x1d   :  { %p734_p0 = por %p733_p13, %p732_p12 }
  0x1f   :  { %p735_p1 = pnand %p734_p0, %p728_p11 }
  0x21   :  { %738 = shalt.err (!%p735_p1)
}
  0x22   :  { %s771_s0 = smov 384   ;;  %s772_s9 = smov 24  }
  0x23   :  { %34 = dma.hbm_to_vmem [thread:$0]  %s852_s1, 1536, %s29_s27, [#allocation6], %s771_s0, %s771_s0, %s772_s9  }
  0x24   :  { %761 = dma.done.wait [#allocation3], 128  }
  0x25   :  { %762 = vsyncadd [#allocation3], 4294967168 }
  0x26   :  { %763 = dma.done.wait [#allocation6], 1536  }
  0x27   :  { %764 = vsyncadd [#allocation6], 4294965760  ;;  %v773_v0 = vmov 0.0   ;;  %v774_v1 = vmov 0.0|0.0   ;;  %v46_v2 = vld [vmem:[#allocation5 + $0x8] sm:$0xff]  ;;  %v49_v3 = vld [vmem:[#allocation5 + $0x20] sm:$0xff]  ;;  %v59_v21 = vlaneseq }
  0x28   :  { %144 = vmatprep.mubr.f32.mxu0 %v773_v0  ;;  %670 = vmatprep.subr.bf16.mxu1 %v774_v1  ;;  %v45_v4 = vld [vmem:[#allocation5] sm:$0xff]  ;;  %v662_v5 = vpack.c.bf16 %v49_v3, %v46_v2  ;;  %v48_v6 = vld [vmem:[#allocation5 + $0x18] sm:$0xff]  ;;  %v55_v8 = vld [vmem:[#allocation5 + $0x50] sm:$0xff]  ;;  %vm77_vm0 = vcmask 261120   ;;  %vm775_vm1 = vmmov 0   ;;  %vm420_vm2 = vcmask 1043456  }
  0x29   :  { %v52_v7 = vld [vmem:[#allocation5 + $0x38] sm:$0xff]  ;;  %v664_v9 = vpack.c.bf16 %v48_v6, %v45_v4  ;;  %v51_v11 = vld [vmem:[#allocation5 + $0x30] sm:$0xff]  ;;  %v54_v12 = vld [vmem:[#allocation5 + $0x48] sm:$0xff]  ;;  %639 = vmatprep.mubr.msk.f32.mxu1 %vm775_vm1, %v773_v0  ;;  %v60_v22 = vshrl.u32 %v59_v21, 7  ;;  %vm377_vm3 = vcmask 27648   ;;  %vm416_vm4 = vcmask 31744  }
  0x2a   :  { %v666_v10 = vpack.c.bf16 %v55_v8, %v52_v7  ;;  %663 = vmatprep.subr.bf16.mxu0 %v662_v5  ;;  %v47_v13 = vld [vmem:[#allocation5 + $0x10] sm:$0xff]  ;;  %v668_v14 = vpack.c.bf16 %v54_v12, %v51_v11  ;;  %v50_v15 = vld [vmem:[#allocation5 + $0x28] sm:$0xff]  ;;  %v53_v16 = vld [vmem:[#allocation5 + $0x40] sm:$0xff]  ;;  %vm568_vm5 = vcmask 257024   ;;  %vm587_vm6 = vcmask 1041409  }
  0x2b   :  { %665 = vmatpush1.bf16.msra.mxu0 %v664_v9  ;;  %v56_v17 = vld [vmem:[#allocation5 + $0x58] sm:$0xff]  ;;  %v671_v18 = vpack.c.bf16 %v50_v15, %v47_v13  ;;  %v65_v23 = vsub.s32 1, %v60_v22  ;;  %v61_v25 = vsub.s32 0, %v60_v22  ;;  %v69_v34 = vsub.s32 2, %v60_v22 }
  0x2c   :  { %667 = vmatprep.subr.bf16.mxu0 %v666_v10  ;;  %v686_v19 = vld [vmem:[#allocation2] sm:$0xff]   ;;  %v674_v20 = vpack.c.bf16 %v56_v17, %v53_v16  ;;  %vm590_vm7 = vcmask 254976  }
  0x2d   :  { %672 = vmatpush3.bf16.msra.mxu1 %v671_v18  ;;  %v57_v24 = vld [vmem:[%s853_s2] sm:$0x7]  ;;  %s776_s2 = smov [#allocation7]  }
  0x2e   :  { %673 = vmatprep.subr.bf16.mxu1 %v774_v1  ;;  %v66_v26 = vrot.slane %v57_v24, %v65_v23  ;;  %v62_v27 = vrot.slane %v57_v24, %v61_v25  ;;  %v70_v35 = vrot.slane %v57_v24, %v69_v34  ;;  %s598_s13 = sshll.u32 %s776_s2, 4  ;;  %s599_s13 = int_to_ptr.vmem [resolvable:$true] %s598_s13 }
  0x2f   :  { %669 = vmatpush1.bf16.msra.mxu0 %v668_v14  ;;  %s739_s14 = scalar_lea.vmem %s599_s13, 32  ;;  %p744_p3 = scmp.lt.s32.totalorder %s599_s13, %s599_s13 }
  0x30   :  { %642 = vmatprep.subr.mxu0 %v773_v0  ;;  %p740_p2 = scmp.ne.s32.totalorder %s599_s13, %s739_s14  ;;  %p745_p4 = scmp.lt.s32.totalorder %s739_s14, %s739_s14 }
  0x31   :  { %675 = vmatpush3.bf16.msra.mxu1 %v674_v20 }
  0x32   :  { %608 = vmatmul.mubr.msk.f32.vlgmr.msra.gmra.mrb[0].mxu0 %vm77_vm0, %v686_v19  ;;  %647 = vmatprep.subr.mxu1 %v773_v0  ;;  %p746_p5 = por %p745_p4, %p744_p3 }
  0x33   :  { %644 = vmatprep.mubr.msk.f32.mxu0 %vm775_vm1, %v773_v0 }
  0x34   :  { %640 = vmatmul.mubr.msk.f32.vlgmr.msra.gmra.mrb[0].mxu1 %vm77_vm0, %v686_v19  ;;  %p747_p6 = pnand %p746_p5, %p740_p2 }
  0x35   :  { %649 = vmatprep.mubr.msk.f32.mxu1 %vm775_vm1, %v773_v0 }
 0x105   :  { %v146_v28 = vpop.f32.mrb[0].mxu0 }
 0x106   :  { %v148_v29 = vpop.f32.mrb[1].mxu0  ;;  %v147_v31 = vadd.f32 %v146_v28, %v62_v27 }
 0x107   :  { %v149_v30 = vadd.f32 %v148_v29, %v66_v26  ;;  %v217_v36 = vpop.f32.mrb[0].mxu1 }
 0x108   :  { %v222_v33 = vcombine.high %v147_v31, %v147_v31  ;;  %v218_v37 = vadd.f32 %v217_v36, %v70_v35  ;;  %v641_v38 = vpop.f32.mrb[1].mxu1 }
 0x109   :  { %v224_v32 = vcombine.high %v149_v30, %v149_v30  ;;  %643 = vmatpush3.xpose.msk.msra.mxu0 %vm77_vm0, %v149_v30 }
 0x10a   :  { %652 = vmatprep.subr.mxu0 %v773_v0  ;;  %v226_v39 = vcombine.high %v218_v37, %v218_v37 }
 0x10b   :  { %648 = vmatpush3.xpose.msk.msra.mxu1 %vm77_vm0, %v224_v32 }
 0x10c   :  { %645 = vmatmul.mubr.msk.f32.vlgmr.msra.gmra.mrb[2].mxu0 %vm77_vm0, %v147_v31  ;;  %657 = vmatprep.subr.mxu1 %v773_v0 }
 0x10d   :  { %654 = vmatprep.mubr.msk.f32.mxu0 %vm775_vm1, %v773_v0  ;;  %653 = vmatpush3.msk.msra.mxu0 %vm420_vm2, %v218_v37 }
 0x10e   :  { %650 = vmatmul.mubr.msk.f32.vlgmr.msra.gmra.mrb[2].mxu1 %vm77_vm0, %v222_v33 }
 0x10f   :  { %659 = vmatprep.mubr.msk.f32.mxu1 %vm775_vm1, %v773_v0  ;;  %658 = vmatpush3.msk.msra.mxu1 %vm420_vm2, %v226_v39 }
 0x1df   :  { %v297_v40 = vpop.f32.mrb[2].mxu0 }
 0x1e0   :  { %v375_v41 = vmul.f32 0.17677669, %v297_v40  ;;  %v646_v42 = vpop.f32.mrb[3].mxu0 }
 0x1e1   :  { %v371_v43 = vpop.f32.mrb[2].mxu1 }
 0x1e2   :  { %v378_v44 = vsel %vm377_vm3, %v375_v41, -inf  ;;  %v376_v45 = vmul.f32 0.17677669, %v371_v43  ;;  %v651_v46 = vpop.f32.mrb[3].mxu1 }
 0x1e3   :  { %v379_v47 = vrot.slane %v378_v44, 4 }
 0x1e4   :  { %v385_v48 = vsel %vm377_vm3, %v376_v45, -inf }
 0x1e5   :  { %v380_v49 = vmax.f32 %v378_v44, %v379_v47  ;;  %v386_v50 = vrot.slane %v385_v48, 4 }
 0x1e7   :  { %v381_v51 = vrot.slane %v380_v49, 2  ;;  %v387_v52 = vmax.f32 %v385_v48, %v386_v50 }
 0x1e9   :  { %v382_v53 = vmax.f32 %v380_v49, %v381_v51  ;;  %v388_v54 = vrot.slane %v387_v52, 2 }
 0x1eb   :  { %v383_v55 = vrot.slane %v382_v53, 1  ;;  %v389_v56 = vmax.f32 %v387_v52, %v388_v54 }
 0x1ed   :  { %v384_v57 = vmax.f32 %v382_v53, %v383_v55  ;;  %v390_v58 = vrot.slane %v389_v56, 1 }
 0x1ef   :  { %v392_v59 = vsub.f32 %v375_v41, %v384_v57  ;;  %v391_v60 = vmax.f32 %v389_v56, %v390_v58 }
 0x1f1   :  { %v394_v61 = vmul.f32 1.442695, %v392_v59  ;;  %v393_v62 = vsub.f32 %v376_v45, %v391_v60 }
 0x1f3   :  { %687 = vpow2.f32 %v394_v61  ;;  %v396_v63 = vmul.f32 1.442695, %v393_v62 }
 0x1f5   :  { %689 = vpow2.f32 %v396_v63 }
 0x1fd   :  { %v688_v0 = vpop.eup %687 }
 0x1fe   :  { %v398_v1 = vsel %vm377_vm3, %v688_v0, 0.0 }
 0x1ff   :  { %v690_v2 = vpop.eup %689  ;;  %v399_v3 = vrot.slane %v398_v1, 4 }
 0x200   :  { %v405_v4 = vsel %vm377_vm3, %v690_v2, 0.0 }
 0x201   :  { %v400_v5 = vadd.f32 %v399_v3, %v398_v1  ;;  %v406_v6 = vrot.slane %v405_v4, 4 }
 0x203   :  { %v401_v7 = vrot.slane %v400_v5, 2  ;;  %v407_v8 = vadd.f32 %v406_v6, %v405_v4 }
 0x205   :  { %v402_v9 = vadd.f32 %v401_v7, %v400_v5  ;;  %v408_v10 = vrot.slane %v407_v8, 2 }
 0x207   :  { %v403_v11 = vrot.slane %v402_v9, 1  ;;  %v409_v12 = vadd.f32 %v408_v10, %v407_v8 }
 0x209   :  { %v404_v13 = vadd.f32 %v403_v11, %v402_v9  ;;  %v410_v14 = vrot.slane %v409_v12, 1 }
 0x20b   :  { %691 = vrcp.f32 %v404_v13  ;;  %v411_v15 = vadd.f32 %v410_v14, %v409_v12 }
 0x20d   :  { %693 = vrcp.f32 %v411_v15 }
 0x215   :  { %v692_v16 = vpop.eup %691 }
 0x216   :  { %v414_v17 = vmul.f32 %v692_v16, %v688_v0 }
 0x217   :  { %v694_v18 = vpop.eup %693 }
 0x218   :  { %655 = vmatmul.mubr.msk.f32.vlgmr.msra.gmra.mrb[4].mxu0 %vm416_vm4, %v414_v17  ;;  %v415_v19 = vmul.f32 %v694_v18, %v690_v2 }
 0x21a   :  { %660 = vmatmul.mubr.msk.f32.vlgmr.msra.gmra.mrb[4].mxu1 %vm416_vm4, %v415_v19 }
 0x2eb   :  { %v489_v20 = vpop.f32.mrb[4].mxu0 }
 0x2ec   :  { %v569_v21 = vsel %vm568_vm5, %v489_v20, 0.0  ;;  %v656_v22 = vpop.f32.mrb[5].mxu0 }
 0x2ed   :  { %v570_v23 = vrot.slane %v569_v21, 4  ;;  %v564_v24 = vpop.f32.mrb[4].mxu1 }
 0x2ee   :  { %v576_v25 = vsel %vm568_vm5, %v564_v24, 0.0  ;;  %v661_v26 = vpop.f32.mrb[5].mxu1 }
 0x2ef   :  { %v571_v27 = vadd.f32 %v570_v23, %v569_v21  ;;  %v577_v28 = vrot.slane %v576_v25, 4 }
 0x2f1   :  { %v572_v29 = vrot.slane %v571_v27, 2  ;;  %v578_v30 = vadd.f32 %v577_v28, %v576_v25 }
 0x2f3   :  { %v573_v31 = vadd.f32 %v572_v29, %v571_v27  ;;  %v579_v32 = vrot.slane %v578_v30, 2 }
 0x2f5   :  { %v574_v33 = vrot.slane %v573_v31, 1  ;;  %v580_v34 = vadd.f32 %v579_v32, %v578_v30 }
 0x2f7   :  { %v575_v35 = vadd.f32 %v574_v33, %v573_v31  ;;  %v581_v36 = vrot.slane %v580_v34, 1 }
 0x2f9   :  { %v582_v37 = vadd.f32 %v581_v36, %v580_v34  ;;  %v583_v38 = vmul.f32 0.25, %v575_v35 }
 0x2fb   :  { %v584_v39 = vmul.f32 0.25, %v582_v37 }
 0x2fd   :  { %v588_v40 = vsel %vm587_vm6, %v584_v39, %v583_v38 }
 0x2fe   :  { %591 = vst.msk [vmem:[#allocation7] sm:$0x3] %vm590_vm7, %v588_v40 }
 0x2ff   :  { %750 = shalt.err (!%p747_p6)
}
 0x300   :  { %s751_s17 = scalar_lea.hbm %s854_s3, 32 }
 0x301   :  { %p752_p7 = scmp.ne.s32.totalorder %s854_s3, %s751_s17  ;;  %p755_p8 = scmp.lt.u32.totalorder %s751_s17, %s854_s3 }
 0x303   :  { %p757_p9 = pnand %p755_p8, %p752_p7 }
 0x305   :  { %760 = shalt.err (!%p757_p9)
}
 0x306   :  { %601 = dma.vmem_to_hbm [thread:$0]  %s599_s13, 32, %s854_s3, [#allocation4]  }
 0x307   :  { %765 = dma.done.wait [#allocation4], 32  }
 0x308   :  { %766 = vsyncadd [#allocation4], 4294967264 }
 0x309   :  { %605 = vsyncpa [#allocation3], 1 }
 0x30a   :  { %606 = vsyncpa [#allocation6], 1 }
 0x30b   :  { %607 = vsyncpa [#allocation4], 1 }

</bundles_post_ra>
